<compile_context>
chip_gen: v5e
topology: v5e:2x2
jax: 0.10.0
libtpu: 0.0.40
codegen_flags: <defaults>
</compile_context>

<pallas_src>
import jax
import jax.numpy as jnp
from jax.experimental import pallas as pl
from jax.experimental.pallas import tpu as pltpu

H1 = 128                 # fc1 width
H2_PAD = 128             # fc2 width padded 64 -> 128 (zero columns are numerically inert)
MAX_TILE_B = 2048        # target batch rows per grid step
SINGLE_TILE_B = 1024     # at or below this, a single tile beats per-step overhead / megacore
VMEM_LIMIT_BYTES = 32 * 1024 * 1024


def mlp_kernel(x_ref, w1_ref, b1_ref, w2_ref, b2_ref, w3_ref, b3_ref, o_ref):
    # fc1 + ReLU: bf16 MXU operands, f32 accumulation. Keep the (possibly spilled)
    # activation in bf16 — fc2 consumes bf16 anyway, and this halves its VMEM traffic.
    x = x_ref[...].astype(jnp.bfloat16)                                 # (tile_b, d_in)
    h1 = jnp.dot(x, w1_ref[...], preferred_element_type=jnp.float32)    # (tile_b, 128) f32
    h1 = jnp.maximum(h1 + b1_ref[...], 0.0).astype(jnp.bfloat16)        # (tile_b, 128) bf16

    # fc2 + ReLU (outputs padded 64 -> 128; padded columns are exactly zero).
    h2 = jnp.dot(h1, w2_ref[...], preferred_element_type=jnp.float32)   # (tile_b, 128) f32
    h2 = jnp.maximum(h2 + b2_ref[...], 0.0)

    # fc3 (64 -> 1): reduce over the lane axis first (VPU multiply + XLU lane reduce) —
    # no full (tile_b, 128) transpose / second f32 temp. Only the skinny (tile_b, 1)
    # column gets relaid out into the lane-dense (1, tile_b) output row.
    col = jnp.sum(h2 * w3_ref[...], axis=1, keepdims=True)              # (tile_b, 1) f32
    logit = jnp.transpose(col) + b3_ref[...]                            # (1, tile_b)

    o_ref[...] = jax.nn.sigmoid(logit)                                  # lane-dense store


def _round_up(n, m):
    return ((n + m - 1) // m) * m


def _choose_tiling(batch, d_in):
    """Pick (num_tiles, tile_b) given the batch size and the VMEM budget."""
    # Per-row VMEM footprint: x double-buffer (f32) + h1 (bf16) + h2 (f32) + slack.
    bytes_per_row = 2 * d_in * 4 + H1 * 2 + H2_PAD * 4 + 64
    vmem_cap_rows = max(256, ((20 * 1024 * 1024) // bytes_per_row) // 128 * 128)
    max_tile = min(MAX_TILE_B, vmem_cap_rows)

    if batch <= min(SINGLE_TILE_B, max_tile):
        # Small batch: one tile, at most 7 rows of padding, no wasted compute.
        return 1, _round_up(batch, 8)

    # Large batch: >= 2 tiles so ("parallel",) can use both v7x TensorCores; tile_b is a
    # multiple of 128 so the (1, tile_b) output block stays on the unmasked-vst path.
    num_tiles = max(2, pl.cdiv(batch, max_tile))
    tile_b = _round_up(pl.cdiv(batch, num_tiles), 128)
    return num_tiles, tile_b


def binary_classifier_forward(x, params):
    """x: (B, D_in) float32 (or bf16). params: w1(D,128), b1(128,), w2(128,64), b2(64,),
    w3(64,1), b3(1,). Returns sigmoid logits of shape (B, 1)."""
    B, d_in = x.shape
    num_tiles, tile_b = _choose_tiling(B, d_in)
    b_pad = num_tiles * tile_b
    if b_pad != B:
        # Zero rows are numerically inert and sliced off below. Padding is at most ~7 rows
        # in the small-batch case and < num_tiles*128 rows otherwise.
        x = jnp.pad(x, ((0, b_pad - B), (0, 0)))

    # One-time weight prep outside the kernel (bf16 MXU operands, f32 bias / fc3 math).
    # NOTE: x itself is NOT cast in the wrapper — the in-kernel cast avoids an extra
    # full HBM read+write pass over the dominant stream.
    w1 = params["w1"].astype(jnp.bfloat16)                                   # (d_in, 128)
    b1 = params["b1"].astype(jnp.float32).reshape(1, H1)                     # (1, 128)
    w2p = (jnp.zeros((H1, H2_PAD), jnp.float32)
           .at[:, : params["w2"].shape[1]].set(params["w2"])
           .astype(jnp.bfloat16))                                            # (128, 128)
    b2p = (jnp.zeros((1, H2_PAD), jnp.float32)
           .at[0, : params["b2"].shape[0]].set(params["b2"]))                # (1, 128)
    w3p = (jnp.zeros((1, H2_PAD), jnp.float32)
           .at[0, : params["w3"].shape[0]].set(params["w3"][:, 0]))          # (1, 128)
    b3 = params["b3"].astype(jnp.float32).reshape(1, 1)                      # (1, 1)

    resident = lambda shape: pl.BlockSpec(shape, lambda i: (0, 0))  # VMEM-resident weights

    out_row = pl.pallas_call(
        mlp_kernel,
        out_shape=jax.ShapeDtypeStruct((1, b_pad), jnp.float32),
        grid=(num_tiles,),
        in_specs=[
            pl.BlockSpec((tile_b, d_in), lambda i: (i, 0)),   # x streamed per batch tile
            resident(w1.shape),
            resident(b1.shape),
            resident(w2p.shape),
            resident(b2p.shape),
            resident(w3p.shape),
            resident(b3.shape),
        ],
        out_specs=pl.BlockSpec((1, tile_b), lambda i: (0, i)),  # lane-dense output row
        compiler_params=pltpu.CompilerParams(
            dimension_semantics=("parallel",),        # megacore sharding on v7x
            vmem_limit_bytes=VMEM_LIMIT_BYTES,        # v5e default 16 MiB; <= 48 MiB for v7x
        ),
    )(x, w1, b1, w2p, b2p, w3p, b3)

    return out_row[0, :B].reshape(B, 1)


def init_params(key, input_size):
    """Deterministic init mimicking nn.Linear's U(-1/sqrt(fan_in), 1/sqrt(fan_in))."""
    def linear(key, fan_in, fan_out):
        kw, kb = jax.random.split(key)
        bound = 1.0 / jnp.sqrt(fan_in)
        w = jax.random.uniform(kw, (fan_in, fan_out), jnp.float32, -bound, bound)
        b = jax.random.uniform(kb, (fan_out,), jnp.float32, -bound, bound)
        return w, b

    k1, k2, k3 = jax.random.split(key, 3)
    w1, b1 = linear(k1, input_size, 128)
    w2, b2 = linear(k2, 128, 64)
    w3, b3 = linear(k3, 64, 1)
    return {"w1": w1, "b1": b1, "w2": w2, "b2": b2, "w3": w3, "b3": b3}


def reference_forward(x, p):
    h1 = jnp.maximum(x @ p["w1"] + p["b1"], 0.0)
    h2 = jnp.maximum(h1 @ p["w2"] + p["b2"], 0.0)
    return jax.nn.sigmoid(h2 @ p["w3"] + p["b3"])


if __name__ == "__main__":
    key = jax.random.PRNGKey(0)
    kx, kp = jax.random.split(key)

    batch = 8
    input_size = 32  # syndrome bit-vector length

    x = jax.random.uniform(kx, (batch, input_size), jnp.float32)
    params = init_params(kp, input_size)

    out = jax.block_until_ready(binary_classifier_forward(x, params))
    ref = reference_forward(x, params)

    assert out.shape == (batch, 1)
    # bf16 MXU operands (f32 accumulation) -> loosened tolerance vs the pure-f32 reference.
    assert jnp.allclose(out, ref, atol=2e-2, rtol=2e-2), "mismatch vs reference"

    print("KERNEL_OK")
</pallas_src>

<mosaic_0001>
module attributes {stable_mosaic.version = 11 : i64} {
  func.func @mlp_kernel(%arg0: i32, %arg1: memref<8x32xf32, #tpu.memory_space<vmem>>, %arg2: memref<32x128xbf16, #tpu.memory_space<vmem>>, %arg3: memref<1x128xf32, #tpu.memory_space<vmem>>, %arg4: memref<128x128xbf16, #tpu.memory_space<vmem>>, %arg5: memref<1x128xf32, #tpu.memory_space<vmem>>, %arg6: memref<1x128xf32, #tpu.memory_space<vmem>>, %arg7: memref<1x1xf32, #tpu.memory_space<vmem>>, %arg8: memref<1x8xf32, #tpu.memory_space<vmem>>) attributes {dimension_semantics = [#tpu.dimension_semantics<parallel>], iteration_bounds = array<i64: 1>, scalar_prefetch = 0 : i64, scratch_operands = 0 : i64, tpu.core_type = #tpu.core_type<tc>, window_params = [{transform_indices = @transform_0, window_bounds = array<i64: 8, 32>}, {pipeline_mode = #tpu.pipeline_mode<synchronous>, transform_indices = @transform_1, window_bounds = array<i64: 32, 128>}, {pipeline_mode = #tpu.pipeline_mode<synchronous>, transform_indices = @transform_2, window_bounds = array<i64: 1, 128>}, {pipeline_mode = #tpu.pipeline_mode<synchronous>, transform_indices = @transform_3, window_bounds = array<i64: 128, 128>}, {pipeline_mode = #tpu.pipeline_mode<synchronous>, transform_indices = @transform_4, window_bounds = array<i64: 1, 128>}, {pipeline_mode = #tpu.pipeline_mode<synchronous>, transform_indices = @transform_5, window_bounds = array<i64: 1, 128>}, {pipeline_mode = #tpu.pipeline_mode<synchronous>, transform_indices = @transform_6, window_bounds = array<i64: 1, 1>}, {transform_indices = @transform_7, window_bounds = array<i64: 1, 8>}]} {
    %c0 = arith.constant 0 : index
    %c0_0 = arith.constant 0 : index
    %0 = vector.load %arg1[%c0, %c0_0] : memref<8x32xf32, #tpu.memory_space<vmem>>, vector<8x32xf32>
    %1 = arith.truncf %0 : vector<8x32xf32> to vector<8x32xbf16>
    %c0_1 = arith.constant 0 : index
    %c0_2 = arith.constant 0 : index
    %2 = vector.load %arg2[%c0_1, %c0_2] : memref<32x128xbf16, #tpu.memory_space<vmem>>, vector<32x128xbf16>
    %cst = arith.constant dense<0.000000e+00> : vector<8x128xf32>
    %3 = tpu.matmul %1, %2, %cst {dimension_numbers = #tpu.dot_dimension_numbers<[1], [0], [0], [1], [0, 0, 1, 1], [], []>} : vector<8x32xbf16>, vector<32x128xbf16>, vector<8x128xf32> -> vector<8x128xf32>
    %c0_3 = arith.constant 0 : index
    %c0_4 = arith.constant 0 : index
    %4 = vector.load %arg3[%c0_3, %c0_4] : memref<1x128xf32, #tpu.memory_space<vmem>>, vector<1x128xf32>
    %5 = vector.broadcast %4 : vector<1x128xf32> to vector<8x128xf32>
    %6 = arith.addf %3, %5 : vector<8x128xf32>
    %cst_5 = arith.constant 0.000000e+00 : f32
    %7 = vector.broadcast %cst_5 : f32 to vector<8x128xf32>
    %8 = arith.maximumf %6, %7 : vector<8x128xf32>
    %9 = arith.truncf %8 : vector<8x128xf32> to vector<8x128xbf16>
    %c0_6 = arith.constant 0 : index
    %c0_7 = arith.constant 0 : index
    %10 = vector.load %arg4[%c0_6, %c0_7] : memref<128x128xbf16, #tpu.memory_space<vmem>>, vector<128x128xbf16>
    %cst_8 = arith.constant dense<0.000000e+00> : vector<8x128xf32>
    %11 = tpu.matmul %9, %10, %cst_8 {dimension_numbers = #tpu.dot_dimension_numbers<[1], [0], [0], [1], [0, 0, 1, 1], [], []>} : vector<8x128xbf16>, vector<128x128xbf16>, vector<8x128xf32> -> vector<8x128xf32>
    %c0_9 = arith.constant 0 : index
    %c0_10 = arith.constant 0 : index
    %12 = vector.load %arg5[%c0_9, %c0_10] : memref<1x128xf32, #tpu.memory_space<vmem>>, vector<1x128xf32>
    %13 = vector.broadcast %12 : vector<1x128xf32> to vector<8x128xf32>
    %14 = arith.addf %11, %13 : vector<8x128xf32>
    %cst_11 = arith.constant 0.000000e+00 : f32
    %15 = vector.broadcast %cst_11 : f32 to vector<8x128xf32>
    %16 = arith.maximumf %14, %15 : vector<8x128xf32>
    %c0_12 = arith.constant 0 : index
    %c0_13 = arith.constant 0 : index
    %17 = vector.load %arg6[%c0_12, %c0_13] : memref<1x128xf32, #tpu.memory_space<vmem>>, vector<1x128xf32>
    %18 = vector.broadcast %17 : vector<1x128xf32> to vector<8x128xf32>
    %19 = arith.mulf %16, %18 : vector<8x128xf32>
    %cst_14 = arith.constant dense<0.000000e+00> : vector<8xf32>
    %20 = vector.multi_reduction <add>, %19, %cst_14 [1] : vector<8x128xf32> to vector<8xf32>
    %21 = vector.shape_cast %20 : vector<8xf32> to vector<8x1xf32>
    %22 = tpu.transpose %21, [1, 0] : vector<8x1xf32> -> vector<1x8xf32>
    %c0_15 = arith.constant 0 : index
    %c0_16 = arith.constant 0 : index
    %23 = vector.load %arg7[%c0_15, %c0_16] : memref<1x1xf32, #tpu.memory_space<vmem>>, vector<1x1xf32>
    %24 = vector.broadcast %23 : vector<1x1xf32> to vector<1x8xf32>
    %25 = arith.addf %22, %24 : vector<1x8xf32>
    %26 = arith.negf %25 : vector<1x8xf32>
    %27 = math.exp %26 : vector<1x8xf32>
    %cst_17 = arith.constant 1.000000e+00 : f32
    %28 = vector.broadcast %cst_17 : f32 to vector<1x8xf32>
    %29 = arith.addf %28, %27 : vector<1x8xf32>
    %30 = arith.divf %28, %29 : vector<1x8xf32>
    %c0_18 = arith.constant 0 : index
    %c0_19 = arith.constant 0 : index
    %31 = vector.load %arg8[%c0_18, %c0_19] : memref<1x8xf32, #tpu.memory_space<vmem>>, vector<1x8xf32>
    tpu.vector_store %arg8[%c0_18, %c0_19], %30 {strides = array<i32>} : memref<1x8xf32, #tpu.memory_space<vmem>>, vector<1x8xf32>,
    return
  }
  func.func @transform_0(%arg0: i32) -> (i32, i32) {
    %c0_i32 = arith.constant 0 : i32
    %c0_i32_0 = arith.constant 0 : i32
    return %arg0, %c0_i32 : i32, i32
  }
  func.func @transform_1(%arg0: i32) -> (i32, i32) {
    %c0_i32 = arith.constant 0 : i32
    %c0_i32_0 = arith.constant 0 : i32
    %c0_i32_1 = arith.constant 0 : i32
    return %c0_i32, %c0_i32_0 : i32, i32
  }
  func.func @transform_2(%arg0: i32) -> (i32, i32) {
    %c0_i32 = arith.constant 0 : i32
    %c0_i32_0 = arith.constant 0 : i32
    %c0_i32_1 = arith.constant 0 : i32
    return %c0_i32, %c0_i32_0 : i32, i32
  }
  func.func @transform_3(%arg0: i32) -> (i32, i32) {
    %c0_i32 = arith.constant 0 : i32
    %c0_i32_0 = arith.constant 0 : i32
    %c0_i32_1 = arith.constant 0 : i32
    return %c0_i32, %c0_i32_0 : i32, i32
  }
  func.func @transform_4(%arg0: i32) -> (i32, i32) {
    %c0_i32 = arith.constant 0 : i32
    %c0_i32_0 = arith.constant 0 : i32
    %c0_i32_1 = arith.constant 0 : i32
    return %c0_i32, %c0_i32_0 : i32, i32
  }
  func.func @transform_5(%arg0: i32) -> (i32, i32) {
    %c0_i32 = arith.constant 0 : i32
    %c0_i32_0 = arith.constant 0 : i32
    %c0_i32_1 = arith.constant 0 : i32
    return %c0_i32, %c0_i32_0 : i32, i32
  }
  func.func @transform_6(%arg0: i32) -> (i32, i32) {
    %c0_i32 = arith.constant 0 : i32
    %c0_i32_0 = arith.constant 0 : i32
    %c0_i32_1 = arith.constant 0 : i32
    return %c0_i32, %c0_i32_0 : i32, i32
  }
  func.func @transform_7(%arg0: i32) -> (i32, i32) {
    %c0_i32 = arith.constant 0 : i32
    %c0_i32_0 = arith.constant 0 : i32
    return %c0_i32, %arg0 : i32, i32
  }
}

</mosaic_0001>

<bundles_post_ra>
// kernel: tpu_custom_call.1
= control target key start
LH: loop header
LB: loop body
LE: loop exit
PB: predicated region body
PF: predicated region fallthrough
CT: control target
= control target key end

     0   :  { %s525_s0 = inlined_call_operand.hbm [shape: f32[8,32], index: 0, kind: input, shape index: {}]   ;;  %s526_s1 = inlined_call_operand.hbm [shape: bf16[32,128], index: 1, kind: input, shape index: {}]   ;;  %s527_s2 = inlined_call_operand.vmem [shape: f32[1,128], index: 2, kind: input, shape index: {}]   ;;  %s528_s3 = inlined_call_operand.hbm [shape: bf16[128,128], index: 3, kind: input, shape index: {}]   ;;  %s529_s4 = inlined_call_operand.vmem [shape: f32[1,128], index: 4, kind: input, shape index: {}]   ;;  %s530_s5 = inlined_call_operand.vmem [shape: f32[1,128], index: 5, kind: input, shape index: {}]   ;;  %s531_s6 = inlined_call_operand.<no memory space> [shape: f32[1,1], index: 6, kind: input, shape index: {}]   ;;  %s532_s7 = inlined_call_operand.hbm [shape: f32[1,8], index: 7, kind: output, shape index: {}]  }
   0x1   :  { %v12_v0 = vstv %s531_s6 }
   0x2   :  { %13 = vst [vmem:[#allocation2] sm:$0x1] %v12_v0 }
   0x3   :  { %14 = vsyncpa [#allocation4], 0 }
   0x4   :  { %15 = vsyncpa [#allocation7], 0  ;;  %s32_s28 = sshll.u32 %s526_s1, 4  ;;  %s33_s28 = int_to_ptr.hbm [resolvable:$true] %s32_s28 }
   0x5   :  { %16 = vsyncpa [#allocation5], 0  ;;  %s454_s29 = smov [#allocation6]   ;;  %s22_s10 = sshll.u32 %s525_s0, 4  ;;  %s23_s10 = int_to_ptr.hbm [resolvable:$true] %s22_s10 }
   0x6   :  { %s34_s30 = sshll.u32 %s454_s29, 4  ;;  %s455_s11 = smov 64   ;;  %s35_s30 = int_to_ptr.vmem [resolvable:$true] %s34_s30 }
   0x7   :  { %s456_s12 = smov 4   ;;  %s457_s6 = smov [#allocation3]  }
   0x8   :  { %40 = dma.hbm_to_vmem [thread:$0]  %s33_s28, 256, %s35_s30, [#allocation7], %s455_s11, %s455_s11, %s456_s12  }
   0x9   :  { %s24_s13 = sshll.u32 %s457_s6, 4  ;;  %s47_s16 = sshll.u32 %s528_s3, 4  ;;  %s25_s13 = int_to_ptr.vmem [resolvable:$true] %s24_s13  ;;  %s48_s16 = int_to_ptr.hbm [resolvable:$true] %s47_s16 }
   0xa   :  { %27 = dma.hbm_to_vmem [thread:$0]  %s23_s10, 128, %s25_s13, [#allocation4]  }
   0xb   :  { %s458_s1 = smov [#allocation8]  }
   0xc   :  { %s49_s17 = sshll.u32 %s458_s1, 4  ;;  %s50_s17 = int_to_ptr.vmem [resolvable:$true] %s49_s17 }
   0xd   :  { %55 = dma.hbm_to_vmem [thread:$0]  %s48_s16, 1024, %s50_s17, [#allocation7], %s455_s11, %s455_s11, %s456_s12  }
   0xe   :  { %448 = dma.done.wait [#allocation4], 128  }
   0xf   :  { %449 = vsyncadd [#allocation4], 4294967168 }
  0x10   :  { %450 = dma.done.wait [#allocation7], 1280  }
  0x11   :  { %451 = vsyncadd [#allocation7], 4294966016  ;;  %v327_v1 = vld [vmem:[#allocation6 + $0x8] sm:$0xff]  ;;  %v326_v3 = vld [vmem:[#allocation6] sm:$0xff]  ;;  %vm97_vm0 = vcmask 261120   ;;  %v459_v27 = vmov 0  }
  0x12   :  { %v335_v2 = vld [vmem:[#allocation8 + $0x38] sm:$0xff]  ;;  %107 = vmatpush.bf16.msra.mxu0 %v327_v1  ;;  %v75_v4 = vld [vmem:[#allocation3] sm:$0xff]  ;;  %v334_v5 = vld [vmem:[#allocation8 + $0x30] sm:$0xff]  ;;  %344 = vset.pattern.permute.xlu0 %v459_v27  ;;  %s273_s23 = sshll.u32 %s532_s7, 4  ;;  %vm264_vm4 = vcmask 57344   ;;  %s274_s23 = int_to_ptr.hbm [resolvable:$true] %s273_s23 }
  0x13   :  { %184 = vmatpush.bf16.msra.mxu1 %v335_v2  ;;  %v76_v6 = vpack.c.bf16 %v75_v4, %v75_v4  ;;  %v333_v7 = vld [vmem:[#allocation8 + $0x28] sm:$0xff]  ;;  %v332_v8 = vld [vmem:[#allocation8 + $0x20] sm:$0xff]  ;;  %v331_v9 = vld [vmem:[#allocation8 + $0x18] sm:$0xff] }
  0x14   :  { %v330_v10 = vld [vmem:[#allocation8 + $0x10] sm:$0xff]  ;;  %v329_v11 = vld [vmem:[#allocation8 + $0x8] sm:$0xff]  ;;  %v328_v12 = vld [vmem:[#allocation8] sm:$0xff] }
  0x15   :  { %v345_v13 = vld [vmem:[%s527_s2] ss:$0 sm:$0xff]  ;;  %s460_s2 = smov [#allocation9]  }
  0x16   :  { %108 = vmatpush.bf16.msra.mxu0 %v326_v3  ;;  %v346_v19 = vld [vmem:[%s529_s4] ss:$0 sm:$0xff]  ;;  %s271_s4 = sshll.u32 %s460_s2, 4  ;;  %s272_s4 = int_to_ptr.vmem [resolvable:$true] %s271_s4 }
  0x17   :  { %185 = vmatpush.bf16.msra.mxu1 %v334_v5  ;;  %v347_v22 = vld [vmem:[%s530_s5] ss:$0 sm:$0xff] }
  0x18   :  { %v237_v26 = vld [vmem:[#allocation2] sm:$0x1] }
  0x19   :  { %292 = vmatmul.msk.bf16.vlgmr.msra.gmra.mxu0 %vm97_vm0, %v76_v6 }
  0x1b   :  { %186 = vmatpush.bf16.msra.mxu1 %v333_v7 }
  0x1f   :  { %187 = vmatpush.bf16.msra.mxu1 %v332_v8 }
  0x23   :  { %188 = vmatpush.bf16.msra.mxu1 %v331_v9 }
  0x27   :  { %189 = vmatpush.bf16.msra.mxu1 %v330_v10 }
  0x2b   :  { %190 = vmatpush.bf16.msra.mxu1 %v329_v11 }
  0x2f   :  { %191 = vmatpush.bf16.msra.mxu1 %v328_v12 }
  0x96   :  { %v110_v14 = vpop.f32.mrf.mxu0 }
  0x97   :  { %v111_v15 = vadd.f32 %v345_v13, %v110_v14 }
  0x99   :  { %v114_v16 = vmax.f32 %v111_v15, 0.0 }
  0x9b   :  { %v115_v17 = vpack.c.bf16 %v114_v16, %v114_v16 }
  0x9d   :  { %192 = vmatmul.bf16.vlgmr.msra.gmra.mxu1 %v115_v17 }
  0x9e   :  { %v112_v18 = vpop.f32.mrf.mxu0 }
 0x11a   :  { %v193_v20 = vpop.f32.mrf.mxu1 }
 0x11b   :  { %v194_v21 = vadd.f32 %v346_v19, %v193_v20 }
 0x11d   :  { %v197_v23 = vmax.f32 %v194_v21, 0.0 }
 0x11f   :  { %v202_v24 = vmul.f32 %v347_v22, %v197_v23 }
 0x121   :  { %203 = vadd.xlane.f32.xlu0 %v202_v24 }
 0x122   :  { %v195_v25 = vpop.f32.mrf.mxu1 }
 0x135   :  { %240 = vperm.xlu0 %344, %v237_v26  }
 0x194   :  { %v204_v28 = vpop.xlane.xlu0 %203 }
 0x195   :  { %205 = vxpose.xlu1.b32.start.end [1/1] (short) (narrow) %v204_v28, 8 }
 0x1a7   :  { %v241_v29 = vpop.permute.xlu0 %240 }
 0x1a8   :  { %v243_v30 = vperm.slane %v241_v29, 0 }
 0x239   :  { %v221_v31 = vpop.trf.xlu1 }
 0x23a   :  { %v244_v32 = vadd.f32 %v243_v30, %v221_v31 }
 0x23c   :  { %v325_v33 = vmul.f32 -1.442695, %v244_v32 }
 0x23e   :  { %348 = vpow2.f32 %v325_v33 }
 0x244   :  { %v349_v34 = vpop.eup %348 }
 0x245   :  { %v248_v35 = vadd.f32 1.0, %v349_v34 }
 0x247   :  { %350 = vrcp.f32 %v248_v35  ;;  %v260_v39 = vand.u32 2147483648, %v248_v35  ;;  %v258_v41 = vand.u32 2147483647, %v248_v35  ;;  %vm254_vm2 = vweird.f32 %v248_v35 }
 0x249   :  { %v261_v43 = vor.u32 1.1754944e-38, %v260_v39  ;;  %vm259_vm5 = vcmp.eq.f32.partialorder %v258_v41, 8.507059e+37 }
 0x24d   :  { %v351_v36 = vpop.eup %350 }
 0x24e   :  { %v250_v37 = vmul.f32 %v351_v36, %v248_v35  ;;  %vm255_vm1 = vweird.f32 %v351_v36 }
 0x24f   :  { %vm256_vm3 = vmor %vm254_vm2, %vm255_vm1 }
 0x250   :  { %v251_v38 = vsub.f32 1.0, %v250_v37 }
 0x252   :  { %v252_v40 = vmul.f32 %v351_v36, %v251_v38 }
 0x254   :  { %v253_v42 = vadd.f32 %v351_v36, %v252_v40 }
 0x256   :  { %v257_v44 = vsel %vm256_vm3, %v351_v36, %v253_v42 }
 0x257   :  { %v262_v45 = vsel %vm259_vm5, %v261_v43, %v257_v44 }
 0x258   :  { %265 = vst.msk [vmem:[#allocation9] sm:$0x1] %vm264_vm4, %v262_v45 }
 0x259   :  { %276 = dma.vmem_to_hbm [thread:$0]  %s272_s4, 16, %s274_s23, [#allocation5]  }
 0x25a   :  { %452 = dma.done.wait [#allocation5], 16  }
 0x25b   :  { %453 = vsyncadd [#allocation5], 4294967280 }
 0x25c   :  { %281 = vsyncpa [#allocation4], 1 }
 0x25d   :  { %282 = vsyncpa [#allocation7], 1 }
 0x25e   :  { %283 = vsyncpa [#allocation5], 1 }

</bundles_post_ra>
